<compile_context>
chip_gen: v7x
topology: tpu7x:2x2x1
jax: 0.10.0
libtpu: 0.0.40
codegen_flags: <defaults>
</compile_context>

<pallas_src>
import functools

import jax
import jax.numpy as jnp
from jax.experimental import pallas as pl
from jax.experimental.pallas import tpu as pltpu

HIDDEN = 256


# ----------------------------------------------------------------------------
# Pallas kernel: the entire MLP, fused and VMEM-resident
# ----------------------------------------------------------------------------
def _refinement_mlp_kernel(x_ref, w_ref, sb_ref, o_ref, *, max_delta):
    """o = tanh( relu( relu((x@w1)*s1+b1) @ w2 * s2 + b2 ) @ w3 + b3 ) * max_delta.

    w_ref  : (D + 2H, H) bf16 = [w1 (D,H); w2 (H,H); w3 cols zero-padded (H,H)]
    sb_ref : (5, H)      f32  = [s1; shift1; s2; shift2; b3 zero-padded]
    """
    D = x_ref.shape[1]
    H = sb_ref.shape[1]
    cd = w_ref.dtype  # bf16 -> full-rate MXU on v6e/v7x

    # fc1 + folded BN1 + ReLU   (K = D = 32; under-filled MXU pass is fine)
    x = x_ref[...].astype(cd)
    h = jnp.dot(x, w_ref[0:D, :], preferred_element_type=jnp.float32)
    h = jnp.maximum(h * sb_ref[0:1, :] + sb_ref[1:2, :], 0.0)

    # fc2 + folded BN2 + ReLU
    h = jnp.dot(h.astype(cd), w_ref[D:D + H, :],
                preferred_element_type=jnp.float32)
    h = jnp.maximum(h * sb_ref[2:3, :] + sb_ref[3:4, :], 0.0)

    # fc3 + bias, tanh (EUP), scale by max_delta; keep only the D real columns
    h = jnp.dot(h.astype(cd), w_ref[D + H:D + 2 * H, :],
                preferred_element_type=jnp.float32)
    y = jnp.tanh(h + sb_ref[4:5, :]) * max_delta
    o_ref[...] = y[:, 0:D].astype(o_ref.dtype)


# ----------------------------------------------------------------------------
# Wrapper
# ----------------------------------------------------------------------------
def refinement_mlp_forward(x, params, *, max_delta):
    """x: (B, num_landmarks*2) or (B, num_landmarks, 2) -> deltas (B, num_landmarks*2)."""
    if x.ndim == 3:                       # mirrors `x.view(x.size(0), -1)`
        x = x.reshape(x.shape[0], -1)
    x = x.astype(jnp.float32)
    B, D = x.shape
    w_packed = params["w_packed"]
    sb_packed = params["sb_packed"]
    H = sb_packed.shape[1]

    flops = 2 * B * (D * H + H * H + H * H)
    bytes_accessed = (x.size * 4 + w_packed.size * 2
                      + sb_packed.size * 4 + B * D * 4)

    vmem = pl.BlockSpec(memory_space=pltpu.MemorySpace.VMEM)
    out = pl.pallas_call(
        functools.partial(_refinement_mlp_kernel, max_delta=max_delta),
        out_shape=jax.ShapeDtypeStruct((B, D), jnp.float32),
        in_specs=[vmem, vmem, vmem],
        out_specs=vmem,
        cost_estimate=pl.CostEstimate(flops=flops,
                                      transcendentals=B * H,
                                      bytes_accessed=bytes_accessed),
    )(x, w_packed, sb_packed)
    return out


# ----------------------------------------------------------------------------
# Parameter construction (deterministic, synthetic; BN folded for inference)
# ----------------------------------------------------------------------------
def _fold_bn(gamma, beta, mean, var, bias, eps=1e-5):
    scale = gamma / jnp.sqrt(var + eps)
    shift = beta + scale * (bias - mean)
    return scale, shift


def init_params(key, num_landmarks, hidden_dim=HIDDEN, weight_dtype=jnp.bfloat16):
    D = num_landmarks * 2
    H = hidden_dim
    ks = iter(jax.random.split(key, 32))

    def linear(fan_in, shape):            # PyTorch nn.Linear default init
        bound = 1.0 / float(fan_in) ** 0.5
        return jax.random.uniform(next(ks), shape, jnp.float32, -bound, bound)

    def bn_stats(c):                      # synthetic running statistics
        gamma = 1.0 + 0.1 * jax.random.normal(next(ks), (c,), jnp.float32)
        beta = 0.1 * jax.random.normal(next(ks), (c,), jnp.float32)
        mean = 0.1 * jax.random.normal(next(ks), (c,), jnp.float32)
        var = 1.0 + 0.1 * jax.random.uniform(next(ks), (c,), jnp.float32)
        return gamma, beta, mean, var

    w1 = linear(D, (D, H))
    b1 = linear(D, (H,))
    s1, sh1 = _fold_bn(*bn_stats(H), bias=b1)

    w2 = linear(H, (H, H))
    b2 = linear(H, (H,))
    s2, sh2 = _fold_bn(*bn_stats(H), bias=b2)

    w3 = linear(H, (H, D))
    b3 = linear(H, (D,))

    # Packed weight slab: [w1; w2; w3 with output cols zero-padded to H]
    w3_pad = jnp.zeros((H, H), jnp.float32).at[:, :D].set(w3)
    w_packed = jnp.concatenate([w1, w2, w3_pad], axis=0).astype(weight_dtype)

    # Packed scale/shift slab: [s1; shift1; s2; shift2; b3 zero-padded]
    b3_pad = jnp.zeros((H,), jnp.float32).at[:D].set(b3)
    sb_packed = jnp.stack([s1, sh1, s2, sh2, b3_pad], axis=0)  # (5, H) f32

    params = {"w_packed": w_packed, "sb_packed": sb_packed}
    # un-padded f32 copies for the pure-JAX reference check
    ref = {"w1": w1, "w2": w2, "w3": w3, "b3": b3,
           "s1": s1, "sh1": sh1, "s2": s2, "sh2": sh2}
    return params, ref


def _reference_forward(x, ref, max_delta):
    h = jnp.maximum(x @ ref["w1"] * ref["s1"] + ref["sh1"], 0.0)
    h = jnp.maximum(h @ ref["w2"] * ref["s2"] + ref["sh2"], 0.0)
    return jnp.tanh(h @ ref["w3"] + ref["b3"]) * max_delta


# ----------------------------------------------------------------------------
# Demo
# ----------------------------------------------------------------------------
if __name__ == "__main__":
    NUM_LANDMARKS = 16          # input_dim = num_landmarks * 2 = 32
    MAX_DELTA = 2.0
    BATCH = 8

    key = jax.random.PRNGKey(0)
    k_params, k_x = jax.random.split(key)
    params, ref = init_params(k_params, NUM_LANDMARKS)

    # (batch, num_landmarks, 2): the module flattens 3-D inputs itself
    x = jax.random.normal(k_x, (BATCH, NUM_LANDMARKS, 2), jnp.float32)

    fwd = jax.jit(functools.partial(refinement_mlp_forward,
                                    params=params, max_delta=MAX_DELTA))
    y = jax.block_until_ready(fwd(x))

    assert y.shape == (BATCH, NUM_LANDMARKS * 2), y.shape
    assert y.dtype == jnp.float32
    assert bool(jnp.all(jnp.isfinite(y)))
    assert bool(jnp.all(jnp.abs(y) <= MAX_DELTA + 1e-4))

    # correctness vs pure-JAX f32 reference (bf16 MXU operands -> loose tol)
    y_ref = _reference_forward(x.reshape(BATCH, -1), ref, MAX_DELTA)
    assert bool(jnp.allclose(y, y_ref, atol=5e-2, rtol=5e-2)), \
        float(jnp.max(jnp.abs(y - y_ref)))

    print("KERNEL_OK")
</pallas_src>

<mosaic_0001>
module attributes {stable_mosaic.version = 11 : i64} {
  func.func @_refinement_mlp_kernel(%arg0: memref<8x32xf32, #tpu.memory_space<vmem>>, %arg1: memref<544x256xbf16, #tpu.memory_space<vmem>>, %arg2: memref<5x256xf32, #tpu.memory_space<vmem>>, %arg3: memref<8x32xf32, #tpu.memory_space<vmem>>) attributes {dimension_semantics = [], scalar_prefetch = 0 : i64, scratch_operands = 0 : i64, tpu.core_type = #tpu.core_type<tc>} {
    %c0 = arith.constant 0 : index
    %c0_0 = arith.constant 0 : index
    %0 = vector.load %arg0[%c0, %c0_0] : memref<8x32xf32, #tpu.memory_space<vmem>>, vector<8x32xf32>
    %1 = arith.truncf %0 : vector<8x32xf32> to vector<8x32xbf16>
    %c0_1 = arith.constant 0 : index
    %c0_2 = arith.constant 0 : index
    %2 = vector.load %arg1[%c0_1, %c0_2] : memref<544x256xbf16, #tpu.memory_space<vmem>>, vector<32x256xbf16>
    %cst = arith.constant dense<0.000000e+00> : vector<8x256xf32>
    %3 = tpu.matmul %1, %2, %cst {dimension_numbers = #tpu.dot_dimension_numbers<[1], [0], [0], [1], [0, 0, 1, 1], [], []>} : vector<8x32xbf16>, vector<32x256xbf16>, vector<8x256xf32> -> vector<8x256xf32>
    %c0_3 = arith.constant 0 : index
    %c0_4 = arith.constant 0 : index
    %4 = vector.load %arg2[%c0_3, %c0_4] : memref<5x256xf32, #tpu.memory_space<vmem>>, vector<1x256xf32>
    %5 = vector.broadcast %4 : vector<1x256xf32> to vector<8x256xf32>
    %6 = arith.mulf %3, %5 : vector<8x256xf32>
    %c1 = arith.constant 1 : index
    %c0_5 = arith.constant 0 : index
    %7 = vector.load %arg2[%c1, %c0_5] : memref<5x256xf32, #tpu.memory_space<vmem>>, vector<1x256xf32>
    %8 = vector.broadcast %7 : vector<1x256xf32> to vector<8x256xf32>
    %9 = arith.addf %6, %8 : vector<8x256xf32>
    %cst_6 = arith.constant 0.000000e+00 : f32
    %10 = vector.broadcast %cst_6 : f32 to vector<8x256xf32>
    %11 = arith.maximumf %9, %10 : vector<8x256xf32>
    %12 = arith.truncf %11 : vector<8x256xf32> to vector<8x256xbf16>
    %c32 = arith.constant 32 : index
    %c0_7 = arith.constant 0 : index
    %13 = vector.load %arg1[%c32, %c0_7] : memref<544x256xbf16, #tpu.memory_space<vmem>>, vector<256x256xbf16>
    %cst_8 = arith.constant dense<0.000000e+00> : vector<8x256xf32>
    %14 = tpu.matmul %12, %13, %cst_8 {dimension_numbers = #tpu.dot_dimension_numbers<[1], [0], [0], [1], [0, 0, 1, 1], [], []>} : vector<8x256xbf16>, vector<256x256xbf16>, vector<8x256xf32> -> vector<8x256xf32>
    %c2 = arith.constant 2 : index
    %c0_9 = arith.constant 0 : index
    %15 = vector.load %arg2[%c2, %c0_9] : memref<5x256xf32, #tpu.memory_space<vmem>>, vector<1x256xf32>
    %16 = vector.broadcast %15 : vector<1x256xf32> to vector<8x256xf32>
    %17 = arith.mulf %14, %16 : vector<8x256xf32>
    %c3 = arith.constant 3 : index
    %c0_10 = arith.constant 0 : index
    %18 = vector.load %arg2[%c3, %c0_10] : memref<5x256xf32, #tpu.memory_space<vmem>>, vector<1x256xf32>
    %19 = vector.broadcast %18 : vector<1x256xf32> to vector<8x256xf32>
    %20 = arith.addf %17, %19 : vector<8x256xf32>
    %cst_11 = arith.constant 0.000000e+00 : f32
    %21 = vector.broadcast %cst_11 : f32 to vector<8x256xf32>
    %22 = arith.maximumf %20, %21 : vector<8x256xf32>
    %23 = arith.truncf %22 : vector<8x256xf32> to vector<8x256xbf16>
    %c288 = arith.constant 288 : index
    %c0_12 = arith.constant 0 : index
    %24 = vector.load %arg1[%c288, %c0_12] : memref<544x256xbf16, #tpu.memory_space<vmem>>, vector<256x256xbf16>
    %cst_13 = arith.constant dense<0.000000e+00> : vector<8x256xf32>
    %25 = tpu.matmul %23, %24, %cst_13 {dimension_numbers = #tpu.dot_dimension_numbers<[1], [0], [0], [1], [0, 0, 1, 1], [], []>} : vector<8x256xbf16>, vector<256x256xbf16>, vector<8x256xf32> -> vector<8x256xf32>
    %c4 = arith.constant 4 : index
    %c0_14 = arith.constant 0 : index
    %26 = vector.load %arg2[%c4, %c0_14] : memref<5x256xf32, #tpu.memory_space<vmem>>, vector<1x256xf32>
    %27 = vector.broadcast %26 : vector<1x256xf32> to vector<8x256xf32>
    %28 = arith.addf %25, %27 : vector<8x256xf32>
    %29 = math.tanh %28 : vector<8x256xf32>
    %cst_15 = arith.constant 2.000000e+00 : f32
    %30 = vector.broadcast %cst_15 : f32 to vector<8x256xf32>
    %31 = arith.mulf %29, %30 : vector<8x256xf32>
    %32 = vector.extract_strided_slice %31 {offsets = [0, 0], sizes = [8, 32], strides = [1, 1]} : vector<8x256xf32> to vector<8x32xf32>
    %c0_16 = arith.constant 0 : index
    %c0_17 = arith.constant 0 : index
    %33 = vector.load %arg3[%c0_16, %c0_17] : memref<8x32xf32, #tpu.memory_space<vmem>>, vector<8x32xf32>
    tpu.vector_store %arg3[%c0_16, %c0_17], %32 {strides = array<i32>} : memref<8x32xf32, #tpu.memory_space<vmem>>, vector<8x32xf32>,
    return
  }
}

</mosaic_0001>

<bundles_post_ra>
// kernel: refinement_mlp_forward.1
= control target key start
LH: loop header
LB: loop body
LE: loop exit
PB: predicated region body
PF: predicated region fallthrough
CT: control target
= control target key end

     0   :  { %v847_v2 = vmov 0   ;;  %vm42_vm0 = vcmask 261120   ;;  %s1105_s0 = inlined_call_operand.vmem [shape: f32[8,32], index: 0, kind: input, shape index: {}]   ;;  %s1106_s1 = inlined_call_operand.vmem [shape: bf16[544,256], index: 1, kind: input, shape index: {}]   ;;  %s1107_s2 = inlined_call_operand.vmem [shape: f32[5,256], index: 2, kind: input, shape index: {}]   ;;  %s1108_s3 = inlined_call_operand.hbm [shape: f32[8,32], index: 3, kind: output, shape index: {}]  }
   0x1   :  { %v719_v0 = vld [vmem:[%s1106_s1 + $0x4] ss:$8 sps:$4 sm:$0xff]   ;;  %v721_v1 = vld [vmem:[%s1106_s1] ss:$8 sps:$4 sm:$0xff]   ;;  %78 = vmatprep.mubr.bf16.mxu0 %v847_v2  ;;  %v722_v3 = vld [vmem:[%s1106_s1 + $0x14] ss:$8 sps:$4 sm:$0xff]  }
   0x2   :  { %46 = vmatprep.subr.bf16.mxu0 %v719_v0  ;;  %v724_v4 = vld [vmem:[%s1106_s1 + $0x10] ss:$8 sps:$4 sm:$0xff]   ;;  %v16_v5 = vld [vmem:[%s1105_s0] sm:$0xff]  ;;  %v728_v8 = vld [vmem:[%s1106_s1 + $0x34] ss:$8 sps:$4 sm:$0xff]  }
   0x3   :  { %47 = vmatpush1.bf16.msra.mxu0 %v721_v1  ;;  %v725_v6 = vld [vmem:[%s1106_s1 + $0x24] ss:$8 sps:$4 sm:$0xff]   ;;  %v727_v7 = vld [vmem:[%s1106_s1 + $0x20] ss:$8 sps:$4 sm:$0xff]   ;;  %v17_v9 = vpack.c.bf16 %v16_v5, %v16_v5  ;;  %v730_v10 = vld [vmem:[%s1106_s1 + $0x30] ss:$8 sps:$4 sm:$0xff]  }
   0x4   :  { %48 = vmatprep.subr.bf16.mxu0 %v722_v3  ;;  %312 = vmatprep.subr.bf16.mxu1 %v725_v6  ;;  %v731_v11 = vld [vmem:[%s1106_s1 + $0x44] ss:$8 sps:$4 sm:$0xff]   ;;  %v733_v12 = vld [vmem:[%s1106_s1 + $0x40] ss:$8 sps:$4 sm:$0xff]   ;;  %v734_v13 = vld [vmem:[%s1106_s1 + $0x54] ss:$8 sps:$4 sm:$0xff]  }
   0x5   :  { %313 = vmatpush1.bf16.msra.mxu1 %v727_v7  ;;  %v736_v14 = vld [vmem:[%s1106_s1 + $0x50] ss:$8 sps:$4 sm:$0xff]   ;;  %v737_v15 = vld [vmem:[%s1106_s1 + $0x64] ss:$8 sps:$4 sm:$0xff]   ;;  %v739_v16 = vld [vmem:[%s1106_s1 + $0x60] ss:$8 sps:$4 sm:$0xff]  }
   0x6   :  { %314 = vmatprep.subr.bf16.mxu1 %v728_v8  ;;  %v740_v17 = vld [vmem:[%s1106_s1 + $0x74] ss:$8 sps:$4 sm:$0xff]   ;;  %v742_v18 = vld [vmem:[%s1106_s1 + $0x70] ss:$8 sps:$4 sm:$0xff]   ;;  %v743_v19 = vld [vmem:[%s1106_s1 + $0x84] ss:$8 sps:$4 sm:$0xff]  }
   0x7   :  { %49 = vmatpush1.bf16.msra.mxu0 %v724_v4  ;;  %v745_v20 = vld [vmem:[%s1106_s1 + $0x80] ss:$8 sps:$4 sm:$0xff]   ;;  %v746_v21 = vld [vmem:[%s1106_s1 + $0x94] ss:$8 sps:$4 sm:$0xff]   ;;  %v748_v22 = vld [vmem:[%s1106_s1 + $0x90] ss:$8 sps:$4 sm:$0xff]  }
   0x8   :  { %v749_v23 = vld [vmem:[%s1106_s1 + $0xa4] ss:$8 sps:$4 sm:$0xff]  }
   0x9   :  { %315 = vmatpush1.bf16.msra.mxu1 %v730_v10 }
   0xa   :  { %648 = vmatmul.mubr.msk.bf16.vlgmr.msra.gmra.mrb[0].mxu0 %vm42_vm0, %v17_v9  ;;  %316 = vmatprep.subr.bf16.mxu1 %v731_v11 }
   0xd   :  { %317 = vmatpush1.bf16.msra.mxu1 %v733_v12 }
   0xe   :  { %318 = vmatprep.subr.bf16.mxu1 %v734_v13 }
  0x11   :  { %319 = vmatpush1.bf16.msra.mxu1 %v736_v14 }
  0x12   :  { %320 = vmatprep.subr.bf16.mxu1 %v737_v15 }
  0x15   :  { %321 = vmatpush1.bf16.msra.mxu1 %v739_v16 }
  0x16   :  { %322 = vmatprep.subr.bf16.mxu1 %v740_v17 }
  0x19   :  { %323 = vmatpush1.bf16.msra.mxu1 %v742_v18 }
  0x1a   :  { %324 = vmatprep.subr.bf16.mxu1 %v743_v19 }
  0x1d   :  { %325 = vmatpush1.bf16.msra.mxu1 %v745_v20 }
  0x1e   :  { %326 = vmatprep.subr.bf16.mxu1 %v746_v21 }
  0x1f   :  { %8 = vsyncpa [#allocation3], 0  ;;  %v751_v24 = vld [vmem:[%s1106_s1 + $0xa0] ss:$8 sps:$4 sm:$0xff]   ;;  %v752_v25 = vld [vmem:[%s1106_s1 + $0xb4] ss:$8 sps:$4 sm:$0xff]   ;;  %v89_v3 = vlaneseq }
  0x20   :  { %v754_v26 = vld [vmem:[%s1106_s1 + $0xb0] ss:$8 sps:$4 sm:$0xff]   ;;  %v755_v27 = vld [vmem:[%s1106_s1 + $0xc4] ss:$8 sps:$4 sm:$0xff]   ;;  %v757_v28 = vld [vmem:[%s1106_s1 + $0xc0] ss:$8 sps:$4 sm:$0xff]  }
  0x21   :  { %327 = vmatpush1.bf16.msra.mxu1 %v748_v22  ;;  %v758_v29 = vld [vmem:[%s1106_s1 + $0xd4] ss:$8 sps:$4 sm:$0xff]   ;;  %v760_v30 = vld [vmem:[%s1106_s1 + $0xd0] ss:$8 sps:$4 sm:$0xff]   ;;  %v761_v31 = vld [vmem:[%s1106_s1 + $0xe4] ss:$8 sps:$4 sm:$0xff]  }
  0x22   :  { %328 = vmatprep.subr.bf16.mxu1 %v749_v23  ;;  %v763_v32 = vld [vmem:[%s1106_s1 + $0xe0] ss:$8 sps:$4 sm:$0xff]   ;;  %v764_v33 = vld [vmem:[%s1106_s1 + $0xf4] ss:$8 sps:$4 sm:$0xff]   ;;  %v766_v34 = vld [vmem:[%s1106_s1 + $0xf0] ss:$8 sps:$4 sm:$0xff]  }
  0x23   :  { %v767_v35 = vld [vmem:[%s1106_s1 + $0x104] ss:$8 sps:$4 sm:$0xff]   ;;  %v769_v36 = vld [vmem:[%s1106_s1 + $0x100] ss:$8 sps:$4 sm:$0xff]   ;;  %v770_v37 = vld [vmem:[%s1106_s1 + $0x114] ss:$8 sps:$4 sm:$0xff]  }
  0x24   :  { %v772_v38 = vld [vmem:[%s1106_s1 + $0x110] ss:$8 sps:$4 sm:$0xff]   ;;  %v773_v39 = vld [vmem:[%s1106_s1 + $0x120] ss:$8 sps:$4 sm:$0xff]   ;;  %v775_v40 = vld [vmem:[%s1106_s1 + $0x124] ss:$8 sps:$4 sm:$0xff]  }
  0x25   :  { %329 = vmatpush1.bf16.msra.mxu1 %v751_v24  ;;  %v778_v41 = vld [vmem:[%s1106_s1 + $0x134] ss:$8 sps:$4 sm:$0xff]   ;;  %587 = vmatprep.subr.bf16.mxu0 %v775_v40  ;;  %v776_v42 = vld [vmem:[%s1106_s1 + $0x130] ss:$8 sps:$4 sm:$0xff]   ;;  %v781_v43 = vld [vmem:[%s1106_s1 + $0x144] ss:$8 sps:$4 sm:$0xff]  }
  0x26   :  { %330 = vmatprep.subr.bf16.mxu1 %v752_v25  ;;  %588 = vmatpush1.bf16.msra.mxu0 %v773_v39  ;;  %v779_v44 = vld [vmem:[%s1106_s1 + $0x140] ss:$8 sps:$4 sm:$0xff]   ;;  %v784_v45 = vld [vmem:[%s1106_s1 + $0x154] ss:$8 sps:$4 sm:$0xff]   ;;  %v782_v46 = vld [vmem:[%s1106_s1 + $0x150] ss:$8 sps:$4 sm:$0xff]  }
  0x27   :  { %589 = vmatprep.subr.bf16.mxu0 %v778_v41  ;;  %v787_v47 = vld [vmem:[%s1106_s1 + $0x164] ss:$8 sps:$4 sm:$0xff]   ;;  %v785_v48 = vld [vmem:[%s1106_s1 + $0x160] ss:$8 sps:$4 sm:$0xff]   ;;  %v790_v49 = vld [vmem:[%s1106_s1 + $0x174] ss:$8 sps:$4 sm:$0xff]  }
  0x28   :  { %v788_v50 = vld [vmem:[%s1106_s1 + $0x170] ss:$8 sps:$4 sm:$0xff]   ;;  %v793_v51 = vld [vmem:[%s1106_s1 + $0x184] ss:$8 sps:$4 sm:$0xff]   ;;  %v791_v52 = vld [vmem:[%s1106_s1 + $0x180] ss:$8 sps:$4 sm:$0xff]  }
  0x29   :  { %331 = vmatpush1.bf16.msra.mxu1 %v754_v26  ;;  %v796_v53 = vld [vmem:[%s1106_s1 + $0x194] ss:$8 sps:$4 sm:$0xff]   ;;  %v794_v54 = vld [vmem:[%s1106_s1 + $0x190] ss:$8 sps:$4 sm:$0xff]   ;;  %v799_v55 = vld [vmem:[%s1106_s1 + $0x1a4] ss:$8 sps:$4 sm:$0xff]  }
  0x2a   :  { %332 = vmatprep.subr.bf16.mxu1 %v755_v27  ;;  %590 = vmatpush1.bf16.msra.mxu0 %v776_v42  ;;  %v797_v56 = vld [vmem:[%s1106_s1 + $0x1a0] ss:$8 sps:$4 sm:$0xff]   ;;  %v802_v57 = vld [vmem:[%s1106_s1 + $0x1b4] ss:$8 sps:$4 sm:$0xff]   ;;  %v800_v58 = vld [vmem:[%s1106_s1 + $0x1b0] ss:$8 sps:$4 sm:$0xff]  }
  0x2b   :  { %591 = vmatprep.subr.bf16.mxu0 %v781_v43  ;;  %v805_v59 = vld [vmem:[%s1106_s1 + $0x1c4] ss:$8 sps:$4 sm:$0xff]   ;;  %v803_v60 = vld [vmem:[%s1106_s1 + $0x1c0] ss:$8 sps:$4 sm:$0xff]   ;;  %v808_v61 = vld [vmem:[%s1106_s1 + $0x1d4] ss:$8 sps:$4 sm:$0xff]  }
  0x2c   :  { %v806_v62 = vld [vmem:[%s1106_s1 + $0x1d0] ss:$8 sps:$4 sm:$0xff]   ;;  %v811_v63 = vld [vmem:[%s1106_s1 + $0x1e4] ss:$8 sps:$4 sm:$0xff]   ;;  %v809_v0 = vld [vmem:[%s1106_s1 + $0x1e0] ss:$8 sps:$4 sm:$0xff]  }
  0x2d   :  { %333 = vmatpush1.bf16.msra.mxu1 %v757_v28  ;;  %v814_v1 = vld [vmem:[%s1106_s1 + $0x1f4] ss:$8 sps:$4 sm:$0xff]   ;;  %v812_v2 = vld [vmem:[%s1106_s1 + $0x1f0] ss:$8 sps:$4 sm:$0xff]   ;;  %v90_v4 = vshrl.u32 %v89_v3, 7  ;;  %s848_s19 = smov [#allocation2]  }
  0x2e   :  { %334 = vmatprep.subr.bf16.mxu1 %v758_v29  ;;  %592 = vmatpush1.bf16.msra.mxu0 %v779_v44  ;;  %v87_v6 = vld [vmem:[%s1107_s2] ss:$8 sm:$0x3]  ;;  %v649_v8 = vld [vmem:[%s1107_s2 + $0x1] ss:$8 sm:$0x3] }
  0x2f   :  { %593 = vmatprep.subr.bf16.mxu0 %v784_v45  ;;  %v91_v5 = vsub.s32 0, %v90_v4  ;;  %v95_v7 = vsub.s32 1, %v90_v4  ;;  %v817_v25 = vld [vmem:[%s1106_s1 + $0x204] ss:$8 sps:$4 sm:$0xff]   ;;  %v815_v26 = vld [vmem:[%s1106_s1 + $0x200] ss:$8 sps:$4 sm:$0xff]  }
  0x30   :  { %v820_v27 = vld [vmem:[%s1106_s1 + $0x214] ss:$8 sps:$4 sm:$0xff]   ;;  %v818_v28 = vld [vmem:[%s1106_s1 + $0x210] ss:$8 sps:$4 sm:$0xff]   ;;  %s636_s20 = sshll.u32 %s848_s19, 4  ;;  %s637_s20 = int_to_ptr.vmem [resolvable:$true] %s636_s20 }
  0x31   :  { %335 = vmatpush1.bf16.msra.mxu1 %v760_v30  ;;  %v92_v9 = vrot.slane %v87_v6, %v91_v5  ;;  %v96_v10 = vrot.slane %v87_v6, %v95_v7  ;;  %v107_v11 = vrot.slane %v649_v8, %v91_v5  ;;  %v111_v13 = vrot.slane %v649_v8, %v95_v7  ;;  %v682_v29 = vld [vmem:[%s1107_s2 + $0x2] ss:$8 sm:$0x3]  ;;  %v683_v30 = vld [vmem:[%s1107_s2 + $0x3] ss:$8 sm:$0x3]  ;;  %p828_p1 = scmp.lt.s32.totalorder %s637_s20, %s637_s20 }
  0x32   :  { %336 = vmatprep.subr.bf16.mxu1 %v761_v31  ;;  %594 = vmatpush1.bf16.msra.mxu0 %v782_v46  ;;  %v359_v31 = vrot.slane %v682_v29, %v91_v5  ;;  %s823_s21 = scalar_lea.vmem %s637_s20, 128 }
  0x33   :  { %595 = vmatprep.subr.bf16.mxu0 %v787_v47  ;;  %v684_v47 = vld [vmem:[%s1107_s2 + $0x4] ss:$8 sm:$0x3]  ;;  %p824_p0 = scmp.ne.s32.totalorder %s637_s20, %s823_s21  ;;  %p829_p2 = scmp.lt.s32.totalorder %s823_s21, %s823_s21 }
  0x35   :  { %337 = vmatpush1.bf16.msra.mxu1 %v763_v32  ;;  %v363_v32 = vrot.slane %v682_v29, %v95_v7  ;;  %p830_p3 = por %p829_p2, %p828_p1 }
  0x36   :  { %338 = vmatprep.subr.bf16.mxu1 %v764_v33  ;;  %596 = vmatpush1.bf16.msra.mxu0 %v785_v48  ;;  %v374_v33 = vrot.slane %v683_v30, %v91_v5  ;;  %v425_v48 = vrot.slane %v684_v47, %v91_v5 }
  0x37   :  { %597 = vmatprep.subr.bf16.mxu0 %v790_v49  ;;  %p831_p4 = pnand %p830_p3, %p824_p0 }
  0x39   :  { %339 = vmatpush1.bf16.msra.mxu1 %v766_v34 }
  0x3a   :  { %340 = vmatprep.subr.bf16.mxu1 %v767_v35  ;;  %598 = vmatpush1.bf16.msra.mxu0 %v788_v50  ;;  %v378_v35 = vrot.slane %v683_v30, %v95_v7 }
  0x3b   :  { %599 = vmatprep.subr.bf16.mxu0 %v793_v51 }
  0x3d   :  { %341 = vmatpush1.bf16.msra.mxu1 %v769_v36 }
  0x3e   :  { %342 = vmatprep.subr.bf16.mxu1 %v770_v37  ;;  %600 = vmatpush1.bf16.msra.mxu0 %v791_v52 }
  0x3f   :  { %601 = vmatprep.subr.bf16.mxu0 %v796_v53 }
  0x41   :  { %343 = vmatpush1.bf16.msra.mxu1 %v772_v38 }
  0x42   :  { %602 = vmatpush1.bf16.msra.mxu0 %v794_v54 }
  0x43   :  { %603 = vmatprep.subr.bf16.mxu0 %v799_v55 }
  0x46   :  { %604 = vmatpush1.bf16.msra.mxu0 %v797_v56 }
  0x47   :  { %605 = vmatprep.subr.bf16.mxu0 %v802_v57 }
  0x4a   :  { %606 = vmatpush1.bf16.msra.mxu0 %v800_v58 }
  0x4b   :  { %607 = vmatprep.subr.bf16.mxu0 %v805_v59 }
  0x4e   :  { %608 = vmatpush1.bf16.msra.mxu0 %v803_v60 }
  0x4f   :  { %609 = vmatprep.subr.bf16.mxu0 %v808_v61 }
  0x52   :  { %610 = vmatpush1.bf16.msra.mxu0 %v806_v62 }
  0x53   :  { %611 = vmatprep.subr.bf16.mxu0 %v811_v63 }
  0x56   :  { %612 = vmatpush1.bf16.msra.mxu0 %v809_v0 }
  0x57   :  { %613 = vmatprep.subr.bf16.mxu0 %v814_v1 }
  0x5a   :  { %614 = vmatpush1.bf16.msra.mxu0 %v812_v2 }
  0x5b   :  { %615 = vmatprep.subr.bf16.mxu0 %v817_v25 }
  0x5e   :  { %616 = vmatpush1.bf16.msra.mxu0 %v815_v26 }
  0x5f   :  { %617 = vmatprep.subr.bf16.mxu0 %v820_v27 }
  0x62   :  { %618 = vmatpush1.bf16.msra.mxu0 %v818_v28 }
  0xdd   :  { %v80_v12 = vpop.f32.mrb[0].mxu0 }
  0xde   :  { %v99_v14 = vmul.f32 %v92_v9, %v80_v12  ;;  %v82_v15 = vpop.f32.mrb[1].mxu0 }
  0xdf   :  { %v100_v16 = vmul.f32 %v96_v10, %v82_v15  ;;  %v84_v17 = vpop.f32.mrb[2].mxu0 }
  0xe0   :  { %v114_v18 = vadd.f32 %v107_v11, %v99_v14  ;;  %v85_v19 = vpop.f32.mrb[3].mxu0 }
  0xe1   :  { %v115_v20 = vadd.f32 %v111_v13, %v100_v16 }
  0xe2   :  { %v116_v21 = vmax.f32 %v114_v18, 0.0 }
  0xe3   :  { %v117_v22 = vmax.f32 %v115_v20, 0.0 }
  0xe4   :  { %v118_v24 = vpack.c.bf16 %v116_v21, %v116_v21 }
  0xe5   :  { %v119_v23 = vpack.c.bf16 %v117_v22, %v117_v22 }
  0xe7   :  { %344 = vmatprep.mubr.bf16.mxu1 %v119_v23 }
  0xe8   :  { %345 = vmatmul.mubr.bf16.vlgmr.msra.gmra.mrb[0].mxu1 %v118_v24 }
 0x1bb   :  { %v346_v34 = vpop.f32.mrb[0].mxu1 }
 0x1bc   :  { %v366_v36 = vmul.f32 %v359_v31, %v346_v34  ;;  %v348_v37 = vpop.f32.mrb[1].mxu1 }
 0x1bd   :  { %v367_v38 = vmul.f32 %v363_v32, %v348_v37  ;;  %v350_v39 = vpop.f32.mrb[2].mxu1 }
 0x1be   :  { %v381_v40 = vadd.f32 %v374_v33, %v366_v36  ;;  %v351_v41 = vpop.f32.mrb[3].mxu1 }
 0x1bf   :  { %v382_v42 = vadd.f32 %v378_v35, %v367_v38 }
 0x1c0   :  { %v383_v43 = vmax.f32 %v381_v40, 0.0 }
 0x1c1   :  { %v384_v44 = vmax.f32 %v382_v42, 0.0 }
 0x1c2   :  { %v385_v46 = vpack.c.bf16 %v383_v43, %v383_v43 }
 0x1c3   :  { %v386_v45 = vpack.c.bf16 %v384_v44, %v384_v44 }
 0x1c5   :  { %619 = vmatprep.mubr.bf16.mxu0 %v386_v45 }
 0x1c6   :  { %620 = vmatmul.mubr.bf16.vlgmr.msra.gmra.mrb[4].mxu0 %v385_v46 }
 0x299   :  { %v621_v49 = vpop.f32.mrb[4].mxu0 }
 0x29a   :  { %v622_v50 = vadd.f32 %v621_v49, %v425_v48  ;;  %v623_v51 = vpop.f32.mrb[5].mxu0 }
 0x29b   :  { %v624_v52 = vpop.f32.mrb[6].mxu0 }
 0x29c   :  { %821 = vtanh.f32 %v622_v50  ;;  %v625_v53 = vpop.f32.mrb[7].mxu0 }
 0x2a6   :  { %v822_v54 = vpop.eup %821 }
 0x2a7   :  { %v628_v55 = vmul.f32 2.0, %v822_v54 }
 0x2a9   :  { %629 = vst.msk [vmem:[#allocation2] sm:$0xff] %vm42_vm0, %v628_v55 }
 0x2aa   :  { %834 = shalt.err (!%p831_p4)
}
 0x2ab   :  { %s835_s23 = scalar_lea.hbm %s1108_s3, 128 }
 0x2ac   :  { %p836_p5 = scmp.ne.s32.totalorder %s1108_s3, %s835_s23  ;;  %p839_p6 = scmp.lt.u32.totalorder %s835_s23, %s1108_s3 }
 0x2ae   :  { %p841_p7 = pnand %p839_p6, %p836_p5 }
 0x2b0   :  { %844 = shalt.err (!%p841_p7)
}
 0x2b1   :  { %639 = dma.vmem_to_hbm [thread:$0]  %s637_s20, 128, %s1108_s3, [#allocation3]  }
 0x2b2   :  { %845 = dma.done.wait [#allocation3], 128  }
 0x2b3   :  { %846 = vsyncadd [#allocation3], 4294967168 }
 0x2b4   :  { %643 = vsyncpa [#allocation3], 1 }

</bundles_post_ra>
